<compile_context>
chip_gen: v5e
topology: v5e:2x2
jax: 0.10.0
libtpu: 0.0.40
codegen_flags: <defaults>
</compile_context>

<pallas_src>
import jax
import jax.numpy as jnp
from jax.experimental import pallas as pl
from jax.experimental.pallas import tpu as pltpu

H0, H1, H2 = 1000, 200, 1          # logical (PyTorch) hidden sizes
H0_PAD, H1_PAD = 1024, 256         # padded to multiples of 128/256 for clean MXU tiles


def prior_disc_kernel(x_ref, w0_ref, b0_ref, w1_ref, b1_ref, w2_ref, o_ref):
    # x: (tile_b, sz) f32 ; w0: (sz, 1024) bf16 ; w1: (1024, 256) bf16 ; w2: (1, 256) f32
    # o: (1, tile_b) f32 (lane-dense row).
    x = x_ref[...].astype(jnp.bfloat16)          # cast on the VPU; no extra HBM pass

    # layer 0: MXU matmul, fp32 accumulation, bias + ReLU on the VPU.
    h = jnp.dot(x, w0_ref[...], preferred_element_type=jnp.float32) + b0_ref[...]
    h = jnp.maximum(h, 0.0).astype(jnp.bfloat16)

    # layer 1 (padded lane 200 becomes a constant 1.0 "bias unit" for layer 2).
    h = jnp.dot(h, w1_ref[...], preferred_element_type=jnp.float32) + b1_ref[...]
    h = jnp.maximum(h, 0.0)                      # (tile_b, 256) f32

    # layer 2 (256 -> 1), lane-dense: XLU transpose of h then a single
    # (1,256)x(256,tile_b) MXU pass -> z is already a (1, tile_b) row.
    # b2 rides in w2[0, 200] against the constant-1 lane, so no separate bias add.
    z = jnp.dot(w2_ref[...], h.T, preferred_element_type=jnp.float32)

    # sigmoid: exp on the EUP, approximate reciprocal also on the EUP (free slots).
    # TODO(synk): drop approx=True if this feeds a calibrated probability / training loss.
    o_ref[...] = pl.reciprocal(1.0 + jnp.exp(-z), approx=True).astype(o_ref.dtype)


def _pick_tile_b(B):
    if B <= 128:
        return B          # single step: tiny batch, no per-step overhead
    if B < 1024:
        return 128        # >=2 steps -> both v7x TCs busy; natural v5e MXU M granule
    return 512            # fat steps amortize the ~0.35us/step overhead (v6e)


def prior_discriminator(x, packed, *, tile_b=None):
    """x: (B, sz) float32. packed: dict from pack_params() (padded weights)."""
    B, sz = x.shape
    w0, b0 = packed["w0"], packed["b0"]
    w1, b1 = packed["w1"], packed["b1"]
    w2 = packed["w2"]

    if tile_b is None:
        tile_b = _pick_tile_b(B)
    n_steps = pl.cdiv(B, tile_b)

    # VMEM budget from the actual buffers (x tile + output row double-buffered,
    # weights/biases resident, activation + transpose staging) with headroom.
    # TODO(synk): for very large sz (esp. v7x's 64 MiB VMEM), K-tile w0 over sz with a
    # fp32 accumulator + pl.when init/finalize instead of keeping (sz, 1024) resident,
    # and single-buffer the constant-index weight specs (pipeline_mode=pl.Buffered(1)).
    vmem_bytes = (
        2 * tile_b * sz * 4              # x tile (f32), double buffered
        + 2 * sz * H0_PAD * 2            # w0 (bf16)
        + 2 * H0_PAD * H1_PAD * 2        # w1 (bf16)
        + 2 * (H0_PAD + 2 * H1_PAD) * 4  # b0, b1, w2 rows (f32)
        + 2 * tile_b * 4                 # output row, double buffered
        + tile_b * H0_PAD * 4            # h0 staging (f32)
        + 3 * tile_b * H1_PAD * 4        # h1 + transpose staging (f32)
    )
    vmem_limit = min(int(vmem_bytes * 1.5) + (4 << 20), 64 << 20)

    cost = pl.CostEstimate(
        flops=2 * B * (sz * H0_PAD + H0_PAD * H1_PAD + H1_PAD),
        transcendentals=2 * B,
        bytes_accessed=(B * sz * 4 + sz * H0_PAD * 2 + H0_PAD * H1_PAD * 2
                        + (H0_PAD + 2 * H1_PAD) * 4 + n_steps * tile_b * 4),
    )

    out = pl.pallas_call(
        prior_disc_kernel,
        out_shape=jax.ShapeDtypeStruct((1, n_steps * tile_b), jnp.float32),
        grid_spec=pltpu.PrefetchScalarGridSpec(
            num_scalar_prefetch=0,
            grid=(n_steps,),
            in_specs=[
                pl.BlockSpec((tile_b, sz), lambda i: (i, 0)),      # x tile (f32)
                pl.BlockSpec((sz, H0_PAD), lambda i: (0, 0)),      # w0 (bf16)
                pl.BlockSpec((1, H0_PAD), lambda i: (0, 0)),       # b0 (f32)
                pl.BlockSpec((H0_PAD, H1_PAD), lambda i: (0, 0)),  # w1 (bf16)
                pl.BlockSpec((1, H1_PAD), lambda i: (0, 0)),       # b1 (f32, +bias unit)
                pl.BlockSpec((1, H1_PAD), lambda i: (0, 0)),       # w2 row (f32, +b2)
            ],
            out_specs=pl.BlockSpec((1, tile_b), lambda i: (0, i)), # lane-dense row
        ),
        compiler_params=pltpu.CompilerParams(
            dimension_semantics=("parallel",),
            vmem_limit_bytes=vmem_limit,
        ),
        cost_estimate=cost,
    )(x, w0, b0, w1, b1, w2)

    # Columns past B (ragged last input tile) hold masked-block garbage; slice them
    # off and restore the module's (B, 1) output shape.
    return out[0, :B].reshape(B, H2)


def init_params(key, sz):
    """fp32, unpadded params matching nn.Linear init; weights stored as (in, out)."""
    k0, k1, k2, k3, k4, k5 = jax.random.split(key, 6)

    def lin_init(kw, kb, fan_in, fan_out):
        bound = 1.0 / jnp.sqrt(fan_in)
        w = jax.random.uniform(kw, (fan_in, fan_out), jnp.float32, -bound, bound)
        b = jax.random.uniform(kb, (1, fan_out), jnp.float32, -bound, bound)
        return w, b

    w0, b0 = lin_init(k0, k1, sz, H0)
    w1, b1 = lin_init(k2, k3, H0, H1)
    w2, b2 = lin_init(k4, k5, H1, H2)
    return {"w0": w0, "b0": b0, "w1": w1, "b1": b1, "w2": w2, "b2": b2}


def pack_params(p):
    """Zero-pad hidden dims to 1024/256, cast big weights to bf16.

    Padded units are exact zeros through bias+ReLU so the forward pass is unchanged,
    except lane H1 (=200) of layer 1: w1[:,200]=0 and b1[200]=1 make h1[:,200] an exact
    constant 1.0, and w2[0,200]=b2 folds the final bias into the last matmul.
    """
    sz = p["w0"].shape[0]
    w0 = jnp.zeros((sz, H0_PAD), jnp.float32).at[:, :H0].set(p["w0"]).astype(jnp.bfloat16)
    b0 = jnp.zeros((1, H0_PAD), jnp.float32).at[:, :H0].set(p["b0"])
    w1 = jnp.zeros((H0_PAD, H1_PAD), jnp.float32).at[:H0, :H1].set(p["w1"]).astype(jnp.bfloat16)
    b1 = (jnp.zeros((1, H1_PAD), jnp.float32)
          .at[:, :H1].set(p["b1"])
          .at[0, H1].set(1.0))                      # constant-1 bias unit
    w2 = (jnp.zeros((1, H1_PAD), jnp.float32)
          .at[:, :H1].set(p["w2"].T)                # (1, 256) row
          .at[0, H1].set(p["b2"].reshape(())))      # b2 folded in
    return {"w0": w0, "b0": b0, "w1": w1, "b1": b1, "w2": w2}


def reference(x, p):
    h = jax.nn.relu(x @ p["w0"] + p["b0"])
    h = jax.nn.relu(h @ p["w1"] + p["b1"])
    return jax.nn.sigmoid(h @ p["w2"] + p["b2"])


if __name__ == "__main__":
    key = jax.random.PRNGKey(0)
    kx, kp = jax.random.split(key)

    B, sz = 16, 32  # small shapes; sz is the module's `sz` arg
    x = jax.random.normal(kx, (B, sz), dtype=jnp.float32)
    params = init_params(kp, sz)
    packed = pack_params(params)

    out = prior_discriminator(x, packed)
    out = jax.block_until_ready(out)

    ref = reference(x, params)
    assert out.shape == (B, 1)
    # bf16 matmuls + approx reciprocal: loosen tolerance vs the fp32 reference.
    assert jnp.allclose(out, ref, atol=2e-2, rtol=2e-2), "mismatch vs JAX reference"

    print("KERNEL_OK")
</pallas_src>

<mosaic_0001>
module attributes {stable_mosaic.version = 11 : i64} {
  func.func @prior_disc_kernel(%arg0: i32, %arg1: memref<16x32xf32, #tpu.memory_space<vmem>>, %arg2: memref<32x1024xbf16, #tpu.memory_space<vmem>>, %arg3: memref<1x1024xf32, #tpu.memory_space<vmem>>, %arg4: memref<1024x256xbf16, #tpu.memory_space<vmem>>, %arg5: memref<1x256xf32, #tpu.memory_space<vmem>>, %arg6: memref<1x256xf32, #tpu.memory_space<vmem>>, %arg7: memref<1x16xf32, #tpu.memory_space<vmem>>) attributes {dimension_semantics = [#tpu.dimension_semantics<parallel>], iteration_bounds = array<i64: 1>, scalar_prefetch = 0 : i64, scratch_operands = 0 : i64, tpu.core_type = #tpu.core_type<tc>, window_params = [{transform_indices = @transform_0, window_bounds = array<i64: 16, 32>}, {pipeline_mode = #tpu.pipeline_mode<synchronous>, transform_indices = @transform_1, window_bounds = array<i64: 32, 1024>}, {pipeline_mode = #tpu.pipeline_mode<synchronous>, transform_indices = @transform_2, window_bounds = array<i64: 1, 1024>}, {pipeline_mode = #tpu.pipeline_mode<synchronous>, transform_indices = @transform_3, window_bounds = array<i64: 1024, 256>}, {pipeline_mode = #tpu.pipeline_mode<synchronous>, transform_indices = @transform_4, window_bounds = array<i64: 1, 256>}, {pipeline_mode = #tpu.pipeline_mode<synchronous>, transform_indices = @transform_5, window_bounds = array<i64: 1, 256>}, {transform_indices = @transform_6, window_bounds = array<i64: 1, 16>}]} {
    %c0 = arith.constant 0 : index
    %c0_0 = arith.constant 0 : index
    %0 = vector.load %arg1[%c0, %c0_0] : memref<16x32xf32, #tpu.memory_space<vmem>>, vector<16x32xf32>
    %1 = arith.truncf %0 : vector<16x32xf32> to vector<16x32xbf16>
    %c0_1 = arith.constant 0 : index
    %c0_2 = arith.constant 0 : index
    %2 = vector.load %arg2[%c0_1, %c0_2] : memref<32x1024xbf16, #tpu.memory_space<vmem>>, vector<32x1024xbf16>
    %cst = arith.constant dense<0.000000e+00> : vector<16x1024xf32>
    %3 = tpu.matmul %1, %2, %cst {dimension_numbers = #tpu.dot_dimension_numbers<[1], [0], [0], [1], [0, 0, 1, 1], [], []>} : vector<16x32xbf16>, vector<32x1024xbf16>, vector<16x1024xf32> -> vector<16x1024xf32>
    %c0_3 = arith.constant 0 : index
    %c0_4 = arith.constant 0 : index
    %4 = vector.load %arg3[%c0_3, %c0_4] : memref<1x1024xf32, #tpu.memory_space<vmem>>, vector<1x1024xf32>
    %5 = vector.broadcast %4 : vector<1x1024xf32> to vector<16x1024xf32>
    %6 = arith.addf %3, %5 : vector<16x1024xf32>
    %cst_5 = arith.constant 0.000000e+00 : f32
    %7 = vector.broadcast %cst_5 : f32 to vector<16x1024xf32>
    %8 = arith.maximumf %6, %7 : vector<16x1024xf32>
    %9 = arith.truncf %8 : vector<16x1024xf32> to vector<16x1024xbf16>
    %c0_6 = arith.constant 0 : index
    %c0_7 = arith.constant 0 : index
    %10 = vector.load %arg4[%c0_6, %c0_7] : memref<1024x256xbf16, #tpu.memory_space<vmem>>, vector<1024x256xbf16>
    %cst_8 = arith.constant dense<0.000000e+00> : vector<16x256xf32>
    %11 = tpu.matmul %9, %10, %cst_8 {dimension_numbers = #tpu.dot_dimension_numbers<[1], [0], [0], [1], [0, 0, 1, 1], [], []>} : vector<16x1024xbf16>, vector<1024x256xbf16>, vector<16x256xf32> -> vector<16x256xf32>
    %c0_9 = arith.constant 0 : index
    %c0_10 = arith.constant 0 : index
    %12 = vector.load %arg5[%c0_9, %c0_10] : memref<1x256xf32, #tpu.memory_space<vmem>>, vector<1x256xf32>
    %13 = vector.broadcast %12 : vector<1x256xf32> to vector<16x256xf32>
    %14 = arith.addf %11, %13 : vector<16x256xf32>
    %cst_11 = arith.constant 0.000000e+00 : f32
    %15 = vector.broadcast %cst_11 : f32 to vector<16x256xf32>
    %16 = arith.maximumf %14, %15 : vector<16x256xf32>
    %c0_12 = arith.constant 0 : index
    %c0_13 = arith.constant 0 : index
    %17 = vector.load %arg6[%c0_12, %c0_13] : memref<1x256xf32, #tpu.memory_space<vmem>>, vector<1x256xf32>
    %18 = tpu.transpose %16, [1, 0] : vector<16x256xf32> -> vector<256x16xf32>
    %cst_14 = arith.constant dense<0.000000e+00> : vector<1x16xf32>
    %19 = tpu.matmul %17, %18, %cst_14 {dimension_numbers = #tpu.dot_dimension_numbers<[1], [0], [0], [1], [0, 0, 1, 1], [], []>} : vector<1x256xf32>, vector<256x16xf32>, vector<1x16xf32> -> vector<1x16xf32>
    %cst_15 = arith.constant 0.000000e+00 : f32
    %20 = vector.broadcast %cst_15 : f32 to vector<1x16xf32>
    %21 = arith.subf %20, %19 : vector<1x16xf32>
    %22 = math.exp %21 : vector<1x16xf32>
    %cst_16 = arith.constant 1.000000e+00 : f32
    %23 = vector.broadcast %cst_16 : f32 to vector<1x16xf32>
    %24 = arith.addf %23, %22 : vector<1x16xf32>
    %25 = tpu.reciprocal %24 {approx = true} : vector<1x16xf32> -> vector<1x16xf32>
    %c0_17 = arith.constant 0 : index
    %c0_18 = arith.constant 0 : index
    %26 = vector.load %arg7[%c0_17, %c0_18] : memref<1x16xf32, #tpu.memory_space<vmem>>, vector<1x16xf32>
    tpu.vector_store %arg7[%c0_17, %c0_18], %25 {strides = array<i32>} : memref<1x16xf32, #tpu.memory_space<vmem>>, vector<1x16xf32>,
    return
  }
  func.func @transform_0(%arg0: i32) -> (i32, i32) {
    %c0_i32 = arith.constant 0 : i32
    %c0_i32_0 = arith.constant 0 : i32
    return %arg0, %c0_i32 : i32, i32
  }
  func.func @transform_1(%arg0: i32) -> (i32, i32) {
    %c0_i32 = arith.constant 0 : i32
    %c0_i32_0 = arith.constant 0 : i32
    %c0_i32_1 = arith.constant 0 : i32
    return %c0_i32, %c0_i32_0 : i32, i32
  }
  func.func @transform_2(%arg0: i32) -> (i32, i32) {
    %c0_i32 = arith.constant 0 : i32
    %c0_i32_0 = arith.constant 0 : i32
    %c0_i32_1 = arith.constant 0 : i32
    return %c0_i32, %c0_i32_0 : i32, i32
  }
  func.func @transform_3(%arg0: i32) -> (i32, i32) {
    %c0_i32 = arith.constant 0 : i32
    %c0_i32_0 = arith.constant 0 : i32
    %c0_i32_1 = arith.constant 0 : i32
    return %c0_i32, %c0_i32_0 : i32, i32
  }
  func.func @transform_4(%arg0: i32) -> (i32, i32) {
    %c0_i32 = arith.constant 0 : i32
    %c0_i32_0 = arith.constant 0 : i32
    %c0_i32_1 = arith.constant 0 : i32
    return %c0_i32, %c0_i32_0 : i32, i32
  }
  func.func @transform_5(%arg0: i32) -> (i32, i32) {
    %c0_i32 = arith.constant 0 : i32
    %c0_i32_0 = arith.constant 0 : i32
    %c0_i32_1 = arith.constant 0 : i32
    return %c0_i32, %c0_i32_0 : i32, i32
  }
  func.func @transform_6(%arg0: i32) -> (i32, i32) {
    %c0_i32 = arith.constant 0 : i32
    %c0_i32_0 = arith.constant 0 : i32
    return %c0_i32, %arg0 : i32, i32
  }
}

</mosaic_0001>

<bundles_post_ra>
// kernel: tpu_custom_call.1
= control target key start
LH: loop header
LB: loop body
LE: loop exit
PB: predicated region body
PF: predicated region fallthrough
CT: control target
= control target key end

     0   :  { %11 = vsyncpa [#allocation3], 0  ;;  %s2411_s0 = inlined_call_operand.hbm [shape: f32[16,32], index: 0, kind: input, shape index: {}]   ;;  %s2412_s1 = inlined_call_operand.hbm [shape: bf16[32,1024], index: 1, kind: input, shape index: {}]   ;;  %s2413_s2 = inlined_call_operand.hbm [shape: f32[1,1024], index: 2, kind: input, shape index: {}]   ;;  %s2414_s3 = inlined_call_operand.hbm [shape: bf16[1024,256], index: 3, kind: input, shape index: {}]   ;;  %s2415_s4 = inlined_call_operand.vmem [shape: f32[1,256], index: 4, kind: input, shape index: {}]   ;;  %s2416_s5 = inlined_call_operand.vmem [shape: f32[1,256], index: 5, kind: input, shape index: {}]   ;;  %s2417_s6 = inlined_call_operand.hbm [shape: f32[1,16], index: 6, kind: output, shape index: {}]  }
   0x1   :  { %12 = vsyncpa [#allocation6], 0 }
   0x2   :  { %13 = vsyncpa [#allocation9], 0  ;;  %s32_s23 = sshll.u32 %s2412_s1, 4  ;;  %s33_s23 = int_to_ptr.hbm [resolvable:$true] %s32_s23 }
   0x3   :  { %14 = vsyncpa [#allocation4], 0  ;;  %s2286_s24 = smov [#allocation5]   ;;  %s19_s28 = sshll.u32 %s2411_s0, 4  ;;  %s20_s28 = int_to_ptr.hbm [resolvable:$true] %s19_s28 }
   0x4   :  { %s34_s25 = sshll.u32 %s2286_s24, 4  ;;  %s2287_s29 = smov 512   ;;  %s35_s25 = int_to_ptr.vmem [resolvable:$true] %s34_s25 }
   0x5   :  { %s2288_s30 = smov 32   ;;  %s2289_s7 = smov [#allocation2]  }
   0x6   :  { %40 = dma.hbm_to_vmem [thread:$0]  %s33_s23, 2048, %s35_s25, [#allocation6], %s2287_s29, %s2287_s29, %s2288_s30  }
   0x7   :  { %s21_s8 = sshll.u32 %s2289_s7, 4  ;;  %s2290_s9 = smov 128   ;;  %s22_s8 = int_to_ptr.vmem [resolvable:$true] %s21_s8 }
   0x8   :  { %s2291_s10 = smov 8   ;;  %s46_s12 = sshll.u32 %s2413_s2, 4  ;;  %s47_s12 = int_to_ptr.hbm [resolvable:$true] %s46_s12 }
   0x9   :  { %27 = dma.hbm_to_vmem [thread:$0]  %s20_s28, 256, %s22_s8, [#allocation3], %s2290_s9, %s2290_s9, %s2291_s10  }
   0xa   :  { %s2292_s13 = smov [#allocation7]   ;;  %s56_s16 = sshll.u32 %s2414_s3, 4  ;;  %s57_s16 = int_to_ptr.hbm [resolvable:$true] %s56_s16 }
   0xb   :  { %s48_s14 = sshll.u32 %s2292_s13, 4  ;;  %s2293_s17 = smov [#allocation8]   ;;  %s49_s14 = int_to_ptr.vmem [resolvable:$true] %s48_s14 }
   0xc   :  { %51 = dma.hbm_to_vmem [thread:$0]  %s47_s12, 128, %s49_s14, [#allocation6]  }
   0xd   :  { %s58_s18 = sshll.u32 %s2293_s17, 4  ;;  %s59_s18 = int_to_ptr.vmem [resolvable:$true] %s58_s18 }
   0xe   :  { %64 = dma.hbm_to_vmem [thread:$0]  %s57_s16, 16384, %s59_s18, [#allocation9], %s2290_s9, %s2290_s9, %s2291_s10  }
   0xf   :  { %2278 = dma.done.wait [#allocation3], 256  }
  0x10   :  { %2279 = vsyncadd [#allocation3], 4294967040 }
  0x11   :  { %2280 = dma.done.wait [#allocation6], 2176  }
  0x12   :  { %2281 = vsyncadd [#allocation6], 4294965120 }
  0x13   :  { %2282 = dma.done.wait [#allocation9], 16384  }
  0x14   :  { %2283 = vsyncadd [#allocation9], 4294950912  ;;  %v1451_v0 = vld [vmem:[#allocation5 + $0x40] sm:$0xf]  ;;  %v2009_v2 = vld [vmem:[#allocation5 + $0x44] sm:$0xf] }
  0x15   :  { %v2013_v1 = vld [vmem:[#allocation5 + $0x5c] sm:$0xf0]  ;;  %v1453_v4 = vld [vmem:[#allocation5 + $0x60] sm:$0xf0]  ;;  %v1459_v5 = vld [vmem:[#allocation5 + $0x48] sm:$0xf] }
  0x16   :  { %v1452_v3 = vor.u32 %v2013_v1, %v1451_v0  ;;  %v2014_v6 = vld [vmem:[#allocation5 + $0x64] sm:$0xf0]  ;;  %v1456_v7 = vor.u32 %v2009_v2, %v1453_v4  ;;  %v2010_v9 = vld [vmem:[#allocation5 + $0x4c] sm:$0xf]  ;;  %v1419_v11 = vld [vmem:[#allocation5] sm:$0xf] }
  0x17   :  { %v1460_v8 = vor.u32 %v2014_v6, %v1459_v5  ;;  %v1461_v10 = vld [vmem:[#allocation5 + $0x68] sm:$0xf0]  ;;  %v2005_v13 = vld [vmem:[#allocation5 + $0x1c] sm:$0xf0]  ;;  %v2001_v14 = vld [vmem:[#allocation5 + $0x4] sm:$0xf] }
  0x18   :  { %213 = vmatpush.bf16.msra.mxu0 %v1452_v3  ;;  %v1464_v12 = vor.u32 %v2010_v9, %v1461_v10  ;;  %v1421_v15 = vld [vmem:[#allocation5 + $0x20] sm:$0xf0]  ;;  %227 = vmatpush.bf16.msra.mxu1 %v1456_v7  ;;  %v1420_v16 = vor.u32 %v2005_v13, %v1419_v11  ;;  %v1427_v18 = vld [vmem:[#allocation5 + $0x8] sm:$0xf]  ;;  %v2002_v20 = vld [vmem:[#allocation5 + $0xc] sm:$0xf] }
  0x19   :  { %241 = vmatpush.bf16.msra.mxu2 %v1460_v8  ;;  %v1424_v17 = vor.u32 %v2001_v14, %v1421_v15  ;;  %v2006_v19 = vld [vmem:[#allocation5 + $0x24] sm:$0xf0]  ;;  %v1429_v22 = vld [vmem:[#allocation5 + $0x28] sm:$0xf0]  ;;  %v86_v23 = vld [vmem:[#allocation2] sm:$0xff]  ;;  %vm203_vm0 = vcmask 261120  }
  0x1a   :  { %255 = vmatpush.bf16.msra.mxu3 %v1464_v12  ;;  %v1428_v21 = vor.u32 %v2006_v19, %v1427_v18  ;;  %v87_v24 = vld [vmem:[#allocation2 + $0x8] sm:$0xff]  ;;  %v1432_v25 = vor.u32 %v2002_v20, %v1429_v22  ;;  %v1467_v27 = vld [vmem:[#allocation5 + $0x50] sm:$0xf]  ;;  %v2011_v29 = vld [vmem:[#allocation5 + $0x54] sm:$0xf]  ;;  %s1405_s23 = sshll.u32 %s2417_s6, 4  ;;  %s1406_s23 = int_to_ptr.hbm [resolvable:$true] %s1405_s23 }
  0x1b   :  { %v2342_v26 = vpack.c.bf16 %v87_v24, %v86_v23  ;;  %v2015_v28 = vld [vmem:[#allocation5 + $0x6c] sm:$0xf0]  ;;  %v1469_v31 = vld [vmem:[#allocation5 + $0x70] sm:$0xf0]  ;;  %v1475_v32 = vld [vmem:[#allocation5 + $0x58] sm:$0xf] }
  0x1c   :  { %214 = vmatpush.bf16.msra.mxu0 %v1420_v16  ;;  %v1468_v30 = vor.u32 %v2015_v28, %v1467_v27  ;;  %v2016_v33 = vld [vmem:[#allocation5 + $0x74] sm:$0xf0]  ;;  %228 = vmatpush.bf16.msra.mxu1 %v1424_v17  ;;  %v1472_v34 = vor.u32 %v2011_v29, %v1469_v31  ;;  %v2012_v36 = vld [vmem:[#allocation5 + $0x5c] sm:$0xf]  ;;  %v1435_v38 = vld [vmem:[#allocation5 + $0x10] sm:$0xf] }
  0x1d   :  { %242 = vmatpush.bf16.msra.mxu2 %v1428_v21  ;;  %v1476_v35 = vor.u32 %v2016_v33, %v1475_v32  ;;  %v1477_v37 = vld [vmem:[#allocation5 + $0x78] sm:$0xf0]  ;;  %v2007_v40 = vld [vmem:[#allocation5 + $0x2c] sm:$0xf0]  ;;  %v2003_v41 = vld [vmem:[#allocation5 + $0x14] sm:$0xf] }
  0x1e   :  { %256 = vmatpush.bf16.msra.mxu3 %v1432_v25  ;;  %v1480_v39 = vor.u32 %v2012_v36, %v1477_v37  ;;  %v1437_v42 = vld [vmem:[#allocation5 + $0x30] sm:$0xf0]  ;;  %v1436_v43 = vor.u32 %v2007_v40, %v1435_v38  ;;  %v1443_v45 = vld [vmem:[#allocation5 + $0x18] sm:$0xf]  ;;  %v2004_v47 = vld [vmem:[#allocation5 + $0x1c] sm:$0xf] }
  0x1f   :  { %1481 = vmatmul.msk.bf16.vlgmr.msra.gmra.mxu0 %vm203_vm0, %v2342_v26  ;;  %v1440_v44 = vor.u32 %v2003_v41, %v1437_v42  ;;  %v2008_v46 = vld [vmem:[#allocation5 + $0x34] sm:$0xf0]  ;;  %1482 = vmatmul.msk.bf16.vlgmr.msra.gmra.mxu1 %vm203_vm0, %v2342_v26  ;;  %v1445_v48 = vld [vmem:[#allocation5 + $0x38] sm:$0xf0]  ;;  %v2032_v50 = vld [vmem:[#allocation8 + $0x74] sm:$0xf0] }
  0x20   :  { %269 = vmatpush.bf16.msrb.mxu0 %v1468_v30  ;;  %283 = vmatpush.bf16.msrb.mxu1 %v1472_v34  ;;  %v1547_v49 = vld [vmem:[#allocation8 + $0x70] sm:$0xf]  ;;  %v1444_v51 = vor.u32 %v2008_v46, %v1443_v45  ;;  %v2048_v54 = vld [vmem:[#allocation8 + $0xf4] sm:$0xf0]  ;;  %v1539_v55 = vld [vmem:[#allocation8 + $0x60] sm:$0xf]  ;;  %v1448_v56 = vor.u32 %v2004_v47, %v1445_v48 }
  0x21   :  { %1483 = vmatmul.msk.bf16.vlgmr.msra.gmra.mxu2 %vm203_vm0, %v2342_v26  ;;  %1484 = vmatmul.msk.bf16.vlgmr.msra.gmra.mxu3 %vm203_vm0, %v2342_v26  ;;  %v1548_v52 = vor.u32 %v2032_v50, %v1547_v49  ;;  %v1611_v53 = vld [vmem:[#allocation8 + $0xf0] sm:$0xf]  ;;  %v2030_v58 = vld [vmem:[#allocation8 + $0x64] sm:$0xf0]  ;;  %v1603_v59 = vld [vmem:[#allocation8 + $0xe0] sm:$0xf] }
  0x22   :  { %297 = vmatpush.bf16.msrb.mxu2 %v1476_v35  ;;  %311 = vmatpush.bf16.msrb.mxu3 %v1480_v39  ;;  %v1612_v57 = vor.u32 %v2048_v54, %v1611_v53  ;;  %v2046_v60 = vld [vmem:[#allocation8 + $0xe4] sm:$0xf0]  ;;  %v1540_v61 = vor.u32 %v2030_v58, %v1539_v55  ;;  %v1675_v62 = vld [vmem:[#allocation8 + $0x170] sm:$0xf]  ;;  %v2064_v63 = vld [vmem:[#allocation8 + $0x174] sm:$0xf0] }
  0x23   :  { %v1739_v0 = vld [vmem:[#allocation8 + $0x1f0] sm:$0xf]  ;;  %v1604_v1 = vor.u32 %v2046_v60, %v1603_v59  ;;  %v1676_v2 = vor.u32 %v2064_v63, %v1675_v62  ;;  %v2080_v3 = vld [vmem:[#allocation8 + $0x1f4] sm:$0xf0]  ;;  %v1667_v9 = vld [vmem:[#allocation8 + $0x160] sm:$0xf] }
  0x24   :  { %270 = vmatpush.bf16.msrb.mxu0 %v1436_v43  ;;  %284 = vmatpush.bf16.msrb.mxu1 %v1440_v44  ;;  %v1531_v4 = vld [vmem:[#allocation8 + $0x50] sm:$0xf]  ;;  %v2028_v5 = vld [vmem:[#allocation8 + $0x54] sm:$0xf0]  ;;  %v1740_v6 = vor.u32 %v2080_v3, %v1739_v0  ;;  %v2062_v10 = vld [vmem:[#allocation8 + $0x164] sm:$0xf0] }
  0x25   :  { %v1595_v7 = vld [vmem:[#allocation8 + $0xd0] sm:$0xf]  ;;  %v2044_v8 = vld [vmem:[#allocation8 + $0xd4] sm:$0xf0]  ;;  %v1731_v11 = vld [vmem:[#allocation8 + $0x1e0] sm:$0xf]  ;;  %v1532_v13 = vor.u32 %v2028_v5, %v1531_v4  ;;  %v1668_v14 = vor.u32 %v2062_v10, %v1667_v9 }
  0x26   :  { %298 = vmatpush.bf16.msrb.mxu2 %v1444_v51  ;;  %312 = vmatpush.bf16.msrb.mxu3 %v1448_v56  ;;  %v2078_v12 = vld [vmem:[#allocation8 + $0x1e4] sm:$0xf0]  ;;  %v1596_v16 = vor.u32 %v2044_v8, %v1595_v7  ;;  %v1659_v17 = vld [vmem:[#allocation8 + $0x150] sm:$0xf]  ;;  %v2060_v18 = vld [vmem:[#allocation8 + $0x154] sm:$0xf0] }
  0x27   :  { %v1732_v15 = vor.u32 %v2078_v12, %v1731_v11  ;;  %v1723_v19 = vld [vmem:[#allocation8 + $0x1d0] sm:$0xf]  ;;  %v2076_v20 = vld [vmem:[#allocation8 + $0x1d4] sm:$0xf0]  ;;  %v1523_v21 = vld [vmem:[#allocation8 + $0x40] sm:$0xf]  ;;  %v1660_v24 = vor.u32 %v2060_v18, %v1659_v17 }
  0x28   :  { %1117 = vmatpush.bf16.msra.mxu0 %v1548_v52  ;;  %1131 = vmatpush.bf16.msra.mxu1 %v1612_v57  ;;  %v2026_v22 = vld [vmem:[#allocation8 + $0x44] sm:$0xf0]  ;;  %v1587_v23 = vld [vmem:[#allocation8 + $0xc0] sm:$0xf]  ;;  %v1724_v27 = vor.u32 %v2076_v20, %v1723_v19  ;;  %v1515_v34 = vld [vmem:[#allocation8 + $0x30] sm:$0xf] }
  0x29   :  { %v2042_v25 = vld [vmem:[#allocation8 + $0xc4] sm:$0xf0]  ;;  %v1651_v28 = vld [vmem:[#allocation8 + $0x140] sm:$0xf]  ;;  %v1524_v32 = vor.u32 %v2026_v22, %v1523_v21  ;;  %v2024_v35 = vld [vmem:[#allocation8 + $0x34] sm:$0xf0] }
  0x2a   :  { %1145 = vmatpush.bf16.msra.mxu2 %v1676_v2  ;;  %1159 = vmatpush.bf16.msra.mxu3 %v1740_v6  ;;  %v2058_v29 = vld [vmem:[#allocation8 + $0x144] sm:$0xf0]  ;;  %v1715_v30 = vld [vmem:[#allocation8 + $0x1c0] sm:$0xf]  ;;  %v1588_v33 = vor.u32 %v2042_v25, %v1587_v23  ;;  %v1579_v36 = vld [vmem:[#allocation8 + $0xb0] sm:$0xf]  ;;  %v1516_v44 = vor.u32 %v2024_v35, %v1515_v34 }
  0x2b   :  { %v2074_v31 = vld [vmem:[#allocation8 + $0x1c4] sm:$0xf0]  ;;  %v1652_v37 = vor.u32 %v2058_v29, %v1651_v28  ;;  %v2040_v38 = vld [vmem:[#allocation8 + $0xb4] sm:$0xf0]  ;;  %v1643_v40 = vld [vmem:[#allocation8 + $0x130] sm:$0xf] }
  0x2c   :  { %1118 = vmatpush.bf16.msra.mxu0 %v1540_v61  ;;  %1132 = vmatpush.bf16.msra.mxu1 %v1604_v1  ;;  %v1716_v39 = vor.u32 %v2074_v31, %v1715_v30  ;;  %v2056_v41 = vld [vmem:[#allocation8 + $0x134] sm:$0xf0]  ;;  %v1707_v42 = vld [vmem:[#allocation8 + $0x1b0] sm:$0xf]  ;;  %v1580_v45 = vor.u32 %v2040_v38, %v1579_v36  ;;  %v1507_v46 = vld [vmem:[#allocation8 + $0x20] sm:$0xf] }
  0x2d   :  { %v2072_v43 = vld [vmem:[#allocation8 + $0x1b4] sm:$0xf0]  ;;  %v2022_v47 = vld [vmem:[#allocation8 + $0x24] sm:$0xf0]  ;;  %v1571_v48 = vld [vmem:[#allocation8 + $0xa0] sm:$0xf]  ;;  %v1644_v49 = vor.u32 %v2056_v41, %v1643_v40 }
  0x2e   :  { %1146 = vmatpush.bf16.msra.mxu2 %v1668_v14  ;;  %1160 = vmatpush.bf16.msra.mxu3 %v1732_v15  ;;  %v2038_v50 = vld [vmem:[#allocation8 + $0xa4] sm:$0xf0]  ;;  %v1708_v51 = vor.u32 %v2072_v43, %v1707_v42  ;;  %v1635_v52 = vld [vmem:[#allocation8 + $0x120] sm:$0xf]  ;;  %v1508_v56 = vor.u32 %v2022_v47, %v1507_v46  ;;  %v1499_v57 = vld [vmem:[#allocation8 + $0x10] sm:$0xf] }
  0x2f   :  { %1485 = vmatmul.msk.bf16.vlgmr.msrb.gmra.mxu0 %vm203_vm0, %v2342_v26  ;;  %1486 = vmatmul.msk.bf16.vlgmr.msrb.gmra.mxu1 %vm203_vm0, %v2342_v26  ;;  %v2054_v53 = vld [vmem:[#allocation8 + $0x124] sm:$0xf0]  ;;  %v1699_v54 = vld [vmem:[#allocation8 + $0x1a0] sm:$0xf]  ;;  %v2020_v58 = vld [vmem:[#allocation8 + $0x14] sm:$0xf0] }
  0x30   :  { %1119 = vmatpush.bf16.msra.mxu0 %v1532_v13  ;;  %1133 = vmatpush.bf16.msra.mxu1 %v1596_v16  ;;  %v2070_v55 = vld [vmem:[#allocation8 + $0x1a4] sm:$0xf0]  ;;  %v1563_v59 = vld [vmem:[#allocation8 + $0x90] sm:$0xf]  ;;  %v1636_v60 = vor.u32 %v2054_v53, %v1635_v52  ;;  %v2036_v61 = vld [vmem:[#allocation8 + $0x94] sm:$0xf0]  ;;  %v1500_v3 = vor.u32 %v2020_v58, %v1499_v57 }
  0x31   :  { %1487 = vmatmul.msk.bf16.vlgmr.msrb.gmra.mxu2 %vm203_vm0, %v2342_v26  ;;  %1488 = vmatmul.msk.bf16.vlgmr.msrb.gmra.mxu3 %vm203_vm0, %v2342_v26  ;;  %v1572_v26 = vor.u32 %v2038_v50, %v1571_v48  ;;  %v1700_v62 = vor.u32 %v2070_v55, %v1699_v54  ;;  %v1627_v63 = vld [vmem:[#allocation8 + $0x110] sm:$0xf]  ;;  %v2052_v0 = vld [vmem:[#allocation8 + $0x114] sm:$0xf0]  ;;  %v1491_v4 = vld [vmem:[#allocation8] sm:$0xf]  ;;  %v1564_v6 = vor.u32 %v2036_v61, %v1563_v59 }
  0x32   :  { %1147 = vmatpush.bf16.msra.mxu2 %v1660_v24  ;;  %1161 = vmatpush.bf16.msra.mxu3 %v1724_v27  ;;  %v1691_v1 = vld [vmem:[#allocation8 + $0x190] sm:$0xf]  ;;  %v2068_v2 = vld [vmem:[#allocation8 + $0x194] sm:$0xf0]  ;;  %v2018_v5 = vld [vmem:[#allocation8 + $0x4] sm:$0xf0]  ;;  %v1628_v10 = vor.u32 %v2052_v0, %v1627_v63 }
  0x33   :  { %v1555_v7 = vld [vmem:[#allocation8 + $0x80] sm:$0xf]  ;;  %v2034_v8 = vld [vmem:[#allocation8 + $0x84] sm:$0xf0]  ;;  %v1803_v9 = vld [vmem:[#allocation8 + $0x270] sm:$0xf]  ;;  %v1692_v14 = vor.u32 %v2068_v2, %v1691_v1  ;;  %v1492_v18 = vor.u32 %v2018_v5, %v1491_v4 }
  0x34   :  { %1120 = vmatpush.bf16.msra.mxu0 %v1524_v32  ;;  %1134 = vmatpush.bf16.msra.mxu1 %v1588_v33  ;;  %v2096_v11 = vld [vmem:[#allocation8 + $0x274] sm:$0xf0]  ;;  %v1867_v12 = vld [vmem:[#allocation8 + $0x2f0] sm:$0xf]  ;;  %v1619_v15 = vld [vmem:[#allocation8 + $0x100] sm:$0xf]  ;;  %v1556_v22 = vor.u32 %v2034_v8, %v1555_v7 }
  0x35   :  { %v2112_v13 = vld [vmem:[#allocation8 + $0x2f4] sm:$0xf0]  ;;  %v2050_v16 = vld [vmem:[#allocation8 + $0x104] sm:$0xf0]  ;;  %v1683_v17 = vld [vmem:[#allocation8 + $0x180] sm:$0xf]  ;;  %v1804_v23 = vor.u32 %v2096_v11, %v1803_v9 }
  0x36   :  { %1148 = vmatpush.bf16.msra.mxu2 %v1652_v37  ;;  %1162 = vmatpush.bf16.msra.mxu3 %v1716_v39  ;;  %v2066_v19 = vld [vmem:[#allocation8 + $0x184] sm:$0xf0]  ;;  %v1931_v20 = vld [vmem:[#allocation8 + $0x370] sm:$0xf]  ;;  %v2128_v21 = vld [vmem:[#allocation8 + $0x374] sm:$0xf0]  ;;  %v1868_v27 = vor.u32 %v2112_v13, %v1867_v12  ;;  %v1620_v30 = vor.u32 %v2050_v16, %v1619_v15 }
  0x37   :  { %v1995_v24 = vld [vmem:[#allocation8 + $0x3f0] sm:$0xf]  ;;  %v2144_v25 = vld [vmem:[#allocation8 + $0x3f4] sm:$0xf0]  ;;  %v1795_v28 = vld [vmem:[#allocation8 + $0x260] sm:$0xf]  ;;  %v1684_v33 = vor.u32 %v2066_v19, %v1683_v17  ;;  %v1932_v34 = vor.u32 %v2128_v21, %v1931_v20 }
  0x38   :  { %1121 = vmatpush.bf16.msra.mxu0 %v1516_v44  ;;  %1135 = vmatpush.bf16.msra.mxu1 %v1580_v45  ;;  %v2094_v29 = vld [vmem:[#allocation8 + $0x264] sm:$0xf0]  ;;  %v1859_v31 = vld [vmem:[#allocation8 + $0x2e0] sm:$0xf]  ;;  %v1996_v35 = vor.u32 %v2144_v25, %v1995_v24  ;;  %v1787_v42 = vld [vmem:[#allocation8 + $0x250] sm:$0xf] }
  0x39   :  { %v2110_v32 = vld [vmem:[#allocation8 + $0x2e4] sm:$0xf0]  ;;  %v1923_v36 = vld [vmem:[#allocation8 + $0x360] sm:$0xf]  ;;  %v1796_v38 = vor.u32 %v2094_v29, %v1795_v28  ;;  %v2092_v43 = vld [vmem:[#allocation8 + $0x254] sm:$0xf0] }
  0x3a   :  { %1149 = vmatpush.bf16.msra.mxu2 %v1644_v49  ;;  %1163 = vmatpush.bf16.msra.mxu3 %v1708_v51  ;;  %v2126_v37 = vld [vmem:[#allocation8 + $0x364] sm:$0xf0]  ;;  %v1987_v39 = vld [vmem:[#allocation8 + $0x3e0] sm:$0xf]  ;;  %v1860_v41 = vor.u32 %v2110_v32, %v1859_v31  ;;  %v1851_v44 = vld [vmem:[#allocation8 + $0x2d0] sm:$0xf]  ;;  %v1788_v48 = vor.u32 %v2092_v43, %v1787_v42 }
  0x3b   :  { %v2142_v40 = vld [vmem:[#allocation8 + $0x3e4] sm:$0xf0]  ;;  %v2108_v45 = vld [vmem:[#allocation8 + $0x2d4] sm:$0xf0]  ;;  %v1924_v46 = vor.u32 %v2126_v37, %v1923_v36  ;;  %v1779_v50 = vld [vmem:[#allocation8 + $0x240] sm:$0xf] }
  0x3c   :  { %1122 = vmatpush.bf16.msra.mxu0 %v1508_v56  ;;  %1136 = vmatpush.bf16.msra.mxu1 %v1572_v26  ;;  %v1988_v47 = vor.u32 %v2142_v40, %v1987_v39  ;;  %v1852_v49 = vor.u32 %v2108_v45, %v1851_v44  ;;  %v2090_v51 = vld [vmem:[#allocation8 + $0x244] sm:$0xf0]  ;;  %v1843_v52 = vld [vmem:[#allocation8 + $0x2c0] sm:$0xf]  ;;  %v1915_v56 = vld [vmem:[#allocation8 + $0x350] sm:$0xf] }
  0x3d   :  { %v2106_v53 = vld [vmem:[#allocation8 + $0x2c4] sm:$0xf0]  ;;  %v1780_v54 = vor.u32 %v2090_v51, %v1779_v50  ;;  %v2124_v26 = vld [vmem:[#allocation8 + $0x354] sm:$0xf0]  ;;  %v1979_v57 = vld [vmem:[#allocation8 + $0x3d0] sm:$0xf] }
  0x3e   :  { %1150 = vmatpush.bf16.msra.mxu2 %v1636_v60  ;;  %1164 = vmatpush.bf16.msra.mxu3 %v1700_v62  ;;  %v1844_v55 = vor.u32 %v2106_v53, %v1843_v52  ;;  %v1916_v58 = vor.u32 %v2124_v26, %v1915_v56  ;;  %v2140_v59 = vld [vmem:[#allocation8 + $0x3d4] sm:$0xf0]  ;;  %v1771_v61 = vld [vmem:[#allocation8 + $0x230] sm:$0xf]  ;;  %v2122_v4 = vld [vmem:[#allocation8 + $0x344] sm:$0xf0] }
  0x3f   :  { %v1980_v60 = vor.u32 %v2140_v59, %v1979_v57  ;;  %v2088_v62 = vld [vmem:[#allocation8 + $0x234] sm:$0xf0]  ;;  %v1835_v63 = vld [vmem:[#allocation8 + $0x2b0] sm:$0xf]  ;;  %v2138_v7 = vld [vmem:[#allocation8 + $0x3c4] sm:$0xf0] }
  0x40   :  { %1123 = vmatpush.bf16.msra.mxu0 %v1500_v3  ;;  %1137 = vmatpush.bf16.msra.mxu1 %v1564_v6  ;;  %v1772_v0 = vor.u32 %v2088_v62, %v1771_v61  ;;  %v2104_v1 = vld [vmem:[#allocation8 + $0x2b4] sm:$0xf0]  ;;  %v1907_v3 = vld [vmem:[#allocation8 + $0x340] sm:$0xf]  ;;  %v2102_v13 = vld [vmem:[#allocation8 + $0x2a4] sm:$0xf0] }
  0x41   :  { %v1836_v2 = vor.u32 %v2104_v1, %v1835_v63  ;;  %v1908_v5 = vor.u32 %v2122_v4, %v1907_v3  ;;  %v1971_v6 = vld [vmem:[#allocation8 + $0x3c0] sm:$0xf]  ;;  %v1899_v15 = vld [vmem:[#allocation8 + $0x330] sm:$0xf]  ;;  %v2120_v16 = vld [vmem:[#allocation8 + $0x334] sm:$0xf0] }
  0x42   :  { %1151 = vmatpush.bf16.msra.mxu2 %v1628_v10  ;;  %1165 = vmatpush.bf16.msra.mxu3 %v1692_v14  ;;  %v1972_v8 = vor.u32 %v2138_v7, %v1971_v6  ;;  %v1763_v9 = vld [vmem:[#allocation8 + $0x220] sm:$0xf]  ;;  %v2086_v10 = vld [vmem:[#allocation8 + $0x224] sm:$0xf0]  ;;  %v1963_v17 = vld [vmem:[#allocation8 + $0x3b0] sm:$0xf] }
  0x43   :  { %v1827_v11 = vld [vmem:[#allocation8 + $0x2a0] sm:$0xf]  ;;  %v1764_v12 = vor.u32 %v2086_v10, %v1763_v9  ;;  %v2136_v19 = vld [vmem:[#allocation8 + $0x3b4] sm:$0xf0]  ;;  %v1755_v21 = vld [vmem:[#allocation8 + $0x210] sm:$0xf] }
  0x44   :  { %1124 = vmatpush.bf16.msra.mxu0 %v1492_v18  ;;  %1138 = vmatpush.bf16.msra.mxu1 %v1556_v22  ;;  %v1828_v14 = vor.u32 %v2102_v13, %v1827_v11  ;;  %v1900_v18 = vor.u32 %v2120_v16, %v1899_v15  ;;  %v1964_v20 = vor.u32 %v2136_v19, %v1963_v17  ;;  %v2084_v22 = vld [vmem:[#allocation8 + $0x214] sm:$0xf0]  ;;  %v1819_v24 = vld [vmem:[#allocation8 + $0x290] sm:$0xf]  ;;  %v1891_v28 = vld [vmem:[#allocation8 + $0x320] sm:$0xf] }
  0x45   :  { %v2100_v25 = vld [vmem:[#allocation8 + $0x294] sm:$0xf0]  ;;  %v2118_v29 = vld [vmem:[#allocation8 + $0x324] sm:$0xf0]  ;;  %v1811_v36 = vld [vmem:[#allocation8 + $0x280] sm:$0xf] }
  0x46   :  { %1152 = vmatpush.bf16.msra.mxu2 %v1620_v30  ;;  %1166 = vmatpush.bf16.msra.mxu3 %v1684_v33  ;;  %v1955_v30 = vld [vmem:[#allocation8 + $0x3a0] sm:$0xf]  ;;  %v1892_v31 = vor.u32 %v2118_v29, %v1891_v28  ;;  %v2134_v32 = vld [vmem:[#allocation8 + $0x3a4] sm:$0xf0]  ;;  %v1883_v40 = vld [vmem:[#allocation8 + $0x310] sm:$0xf] }
  0x47   :  { %v1956_v33 = vor.u32 %v2134_v32, %v1955_v30  ;;  %v1947_v42 = vld [vmem:[#allocation8 + $0x390] sm:$0xf]  ;;  %v2132_v43 = vld [vmem:[#allocation8 + $0x394] sm:$0xf0]  ;;  %v2130_v50 = vld [vmem:[#allocation8 + $0x384] sm:$0xf0] }
  0x48   :  { %1173 = vmatpush.bf16.msrb.mxu0 %v1804_v23  ;;  %1187 = vmatpush.bf16.msrb.mxu1 %v1868_v27  ;;  %v1756_v23 = vor.u32 %v2084_v22, %v1755_v21  ;;  %v1820_v27 = vor.u32 %v2100_v25, %v1819_v24  ;;  %v1948_v45 = vor.u32 %v2132_v43, %v1947_v42  ;;  %v2360_v52 = vld [vmem:[#allocation7] sm:$0xff]  ;;  %v2029_v13 = vld [vmem:[#allocation8 + $0x64] sm:$0xf]  ;;  %v2063_v21 = vld [vmem:[#allocation8 + $0x174] sm:$0xf]  ;;  %vm1396_vm1 = vcmask 122880  }
  0x49   :  { %v108_v56 = vperm.slane %v2360_v52, 1  ;;  %v1549_v1 = vld [vmem:[#allocation8 + $0x78] sm:$0xf0]  ;;  %v109_v3 = vperm.slane %v2360_v52, 2  ;;  %v110_v7 = vperm.slane %v2360_v52, 3  ;;  %v111_v24 = vperm.slane %v2360_v52, 4 }
  0x4a   :  { %1201 = vmatpush.bf16.msrb.mxu2 %v1932_v34  ;;  %1215 = vmatpush.bf16.msrb.mxu3 %v1996_v35  ;;  %v1747_v34 = vld [vmem:[#allocation8 + $0x200] sm:$0xf]  ;;  %v2082_v35 = vld [vmem:[#allocation8 + $0x204] sm:$0xf0]  ;;  %v1613_v6 = vld [vmem:[#allocation8 + $0xf8] sm:$0xf0] }
  0x4b   :  { %v1748_v37 = vor.u32 %v2082_v35, %v1747_v34  ;;  %v2045_v17 = vld [vmem:[#allocation8 + $0xe4] sm:$0xf]  ;;  %v1677_v29 = vld [vmem:[#allocation8 + $0x178] sm:$0xf0]  ;;  %v2079_v30 = vld [vmem:[#allocation8 + $0x1f4] sm:$0xf] }
  0x4c   :  { %1174 = vmatpush.bf16.msrb.mxu0 %v1796_v38  ;;  %1188 = vmatpush.bf16.msrb.mxu1 %v1860_v41  ;;  %v2098_v38 = vld [vmem:[#allocation8 + $0x284] sm:$0xf0]  ;;  %v2116_v41 = vld [vmem:[#allocation8 + $0x314] sm:$0xf0]  ;;  %v1741_v34 = vld [vmem:[#allocation8 + $0x1f8] sm:$0xf0]  ;;  %v1680_v43 = vor.u32 %v2063_v21, %v1677_v29 }
  0x4d   :  { %v1812_v39 = vor.u32 %v2098_v38, %v1811_v36  ;;  %v1884_v44 = vor.u32 %v2116_v41, %v1883_v40  ;;  %v2027_v35 = vld [vmem:[#allocation8 + $0x54] sm:$0xf]  ;;  %v1533_v36 = vld [vmem:[#allocation8 + $0x58] sm:$0xf0] }
  0x4e   :  { %1202 = vmatpush.bf16.msrb.mxu2 %v1924_v46  ;;  %1216 = vmatpush.bf16.msrb.mxu3 %v1988_v47  ;;  %v1875_v46 = vld [vmem:[#allocation8 + $0x300] sm:$0xf]  ;;  %v2114_v47 = vld [vmem:[#allocation8 + $0x304] sm:$0xf0]  ;;  %v1597_v40 = vld [vmem:[#allocation8 + $0xd8] sm:$0xf0] }
  0x50   :  { %1175 = vmatpush.bf16.msrb.mxu0 %v1788_v48  ;;  %1189 = vmatpush.bf16.msrb.mxu1 %v1852_v49  ;;  %v1876_v48 = vor.u32 %v2114_v47, %v1875_v46  ;;  %v1939_v49 = vld [vmem:[#allocation8 + $0x380] sm:$0xf]  ;;  %v1536_v46 = vor.u32 %v2027_v35, %v1533_v36  ;;  %v2061_v47 = vld [vmem:[#allocation8 + $0x164] sm:$0xf]  ;;  %v1573_v36 = vld [vmem:[#allocation8 + $0xa8] sm:$0xf0] }
  0x51   :  { %v1940_v51 = vor.u32 %v2130_v50, %v1939_v49  ;;  %v2077_v49 = vld [vmem:[#allocation8 + $0x1e4] sm:$0xf] }
  0x52   :  { %1203 = vmatpush.bf16.msrb.mxu2 %v1916_v58  ;;  %1217 = vmatpush.bf16.msrb.mxu3 %v1980_v60  ;;  %v2037_v35 = vld [vmem:[#allocation8 + $0xa4] sm:$0xf] }
  0x54   :  { %1176 = vmatpush.bf16.msrb.mxu0 %v1780_v54  ;;  %1190 = vmatpush.bf16.msrb.mxu1 %v1844_v55  ;;  %v107_v54 = vperm.slane %v2360_v52, 0 }
  0x56   :  { %1204 = vmatpush.bf16.msrb.mxu2 %v1908_v5  ;;  %1218 = vmatpush.bf16.msrb.mxu3 %v1972_v8  ;;  %v2047_v5 = vld [vmem:[#allocation8 + $0xf4] sm:$0xf] }
  0x58   :  { %1177 = vmatpush.bf16.msrb.mxu0 %v1772_v0  ;;  %1191 = vmatpush.bf16.msrb.mxu1 %v1836_v2  ;;  %v2031_v0 = vld [vmem:[#allocation8 + $0x74] sm:$0xf] }
  0x59   :  { %v1552_v10 = vor.u32 %v2031_v0, %v1549_v1 }
  0x5a   :  { %1205 = vmatpush.bf16.msrb.mxu2 %v1900_v18  ;;  %1219 = vmatpush.bf16.msrb.mxu3 %v1964_v20  ;;  %v1605_v18 = vld [vmem:[#allocation8 + $0xe8] sm:$0xf0] }
  0x5c   :  { %1178 = vmatpush.bf16.msrb.mxu0 %v1764_v12  ;;  %1192 = vmatpush.bf16.msrb.mxu1 %v1828_v14  ;;  %v1616_v12 = vor.u32 %v2047_v5, %v1613_v6  ;;  %v1541_v14 = vld [vmem:[#allocation8 + $0x68] sm:$0xf0]  ;;  %v1725_v5 = vld [vmem:[#allocation8 + $0x1d8] sm:$0xf0] }
  0x5d   :  { %v1544_v28 = vor.u32 %v2029_v13, %v1541_v14  ;;  %v1517_v13 = vld [vmem:[#allocation8 + $0x38] sm:$0xf0] }
  0x5e   :  { %1206 = vmatpush.bf16.msrb.mxu2 %v1892_v31  ;;  %1220 = vmatpush.bf16.msrb.mxu3 %v1956_v33  ;;  %v1608_v33 = vor.u32 %v2045_v17, %v1605_v18  ;;  %v2039_v17 = vld [vmem:[#allocation8 + $0xb4] sm:$0xf]  ;;  %v1581_v18 = vld [vmem:[#allocation8 + $0xb8] sm:$0xf0] }
  0x60   :  { %1179 = vmatpush.bf16.msrb.mxu0 %v1756_v23  ;;  %1193 = vmatpush.bf16.msrb.mxu1 %v1820_v27  ;;  %v112_v27 = vperm.slane %v2360_v52, 5 }
  0x62   :  { %1207 = vmatpush.bf16.msrb.mxu2 %v1884_v44  ;;  %1221 = vmatpush.bf16.msrb.mxu3 %v1948_v45  ;;  %v1744_v45 = vor.u32 %v2079_v30, %v1741_v34  ;;  %v1584_v30 = vor.u32 %v2039_v17, %v1581_v18  ;;  %v1509_v34 = vld [vmem:[#allocation8 + $0x28] sm:$0xf0]  ;;  %v2051_v17 = vld [vmem:[#allocation8 + $0x114] sm:$0xf]  ;;  %v1629_v18 = vld [vmem:[#allocation8 + $0x118] sm:$0xf0] }
  0x64   :  { %1180 = vmatpush.bf16.msrb.mxu0 %v1748_v37  ;;  %1194 = vmatpush.bf16.msrb.mxu1 %v1812_v39  ;;  %v2043_v39 = vld [vmem:[#allocation8 + $0xd4] sm:$0xf] }
  0x66   :  { %1208 = vmatpush.bf16.msrb.mxu2 %v1876_v48  ;;  %1222 = vmatpush.bf16.msrb.mxu3 %v1940_v51  ;;  %v1669_v48 = vld [vmem:[#allocation8 + $0x168] sm:$0xf0] }
  0x9c   :  { %v216_v53 = vpop.f32.mrf.mxu0  ;;  %v230_v55 = vpop.f32.mrf.mxu1 }
  0x9d   :  { %v217_v26 = vadd.f32 %v216_v53, %v107_v54  ;;  %v231_v57 = vadd.f32 %v230_v55, %v108_v56  ;;  %v1600_v53 = vor.u32 %v2043_v39, %v1597_v40  ;;  %v2025_v55 = vld [vmem:[#allocation8 + $0x44] sm:$0xf]  ;;  %v2055_v39 = vld [vmem:[#allocation8 + $0x134] sm:$0xf]  ;;  %v1645_v40 = vld [vmem:[#allocation8 + $0x138] sm:$0xf0] }
  0x9f   :  { %v319_v61 = vmax.f32 %v217_v26, 0.0  ;;  %v320_v2 = vmax.f32 %v231_v57, 0.0  ;;  %v2041_v57 = vld [vmem:[#allocation8 + $0xc4] sm:$0xf] }
  0xa4   :  { %v244_v58 = vpop.f32.mrf.mxu2  ;;  %v258_v59 = vpop.f32.mrf.mxu3 }
  0xa5   :  { %v218_v60 = vpop.f32.mrf.mxu0  ;;  %v232_v63 = vpop.f32.mrf.mxu1  ;;  %v245_v15 = vadd.f32 %v244_v58, %v109_v3  ;;  %v259_v19 = vadd.f32 %v258_v59, %v110_v7  ;;  %v1589_v58 = vld [vmem:[#allocation8 + $0xc8] sm:$0xf0]  ;;  %v113_v59 = vperm.slane %v2360_v52, 6 }
  0xa6   :  { %v219_v62 = vadd.f32 %v218_v60, %v107_v54  ;;  %v233_v4 = vadd.f32 %v232_v63, %v108_v56  ;;  %v1733_v54 = vld [vmem:[#allocation8 + $0x1e8] sm:$0xf0] }
  0xa7   :  { %v321_v37 = vmax.f32 %v245_v15, 0.0  ;;  %v322_v41 = vmax.f32 %v259_v19, 0.0  ;;  %v1525_v56 = vld [vmem:[#allocation8 + $0x48] sm:$0xf0]  ;;  %v1736_v1 = vor.u32 %v2077_v49, %v1733_v54  ;;  %v2019_v54 = vld [vmem:[#allocation8 + $0x14] sm:$0xf] }
  0xa8   :  { %v327_v8 = vmax.f32 %v219_v62, 0.0  ;;  %v328_v9 = vmax.f32 %v233_v4, 0.0  ;;  %v2059_v62 = vld [vmem:[#allocation8 + $0x154] sm:$0xf] }
  0xa9   :  { %v2075_v4 = vld [vmem:[#allocation8 + $0x1d4] sm:$0xf] }
  0xaa   :  { %v2366_v11 = vpack.c.bf16 %v327_v8, %v319_v61  ;;  %v2368_v16 = vpack.c.bf16 %v328_v9, %v320_v2  ;;  %v1672_v61 = vor.u32 %v2061_v47, %v1669_v48  ;;  %v1528_v2 = vor.u32 %v2025_v55, %v1525_v56  ;;  %v1709_v47 = vld [vmem:[#allocation8 + $0x1b8] sm:$0xf0] }
  0xab   :  { %v1501_v55 = vld [vmem:[#allocation8 + $0x18] sm:$0xf0] }
  0xac   :  { %v246_v20 = vpop.f32.mrf.mxu2  ;;  %1125 = vmatmul.bf16.vlgmr.msra.gmra.mxu0 %v2366_v11  ;;  %v260_v23 = vpop.f32.mrf.mxu3  ;;  %1139 = vmatmul.bf16.vlgmr.msra.gmra.mxu1 %v2368_v16 }
  0xad   :  { %v247_v22 = vadd.f32 %v246_v20, %v109_v3  ;;  %1229 = vmatpush.bf16.msra.mxu0 %v1552_v10  ;;  %v272_v25 = vpop.f32.mrf.mxu0  ;;  %v261_v31 = vadd.f32 %v260_v23, %v110_v7  ;;  %1243 = vmatpush.bf16.msra.mxu1 %v1616_v12  ;;  %v286_v32 = vpop.f32.mrf.mxu1  ;;  %v1661_v3 = vld [vmem:[#allocation8 + $0x158] sm:$0xf0]  ;;  %v114_v7 = vperm.slane %v2360_v52, 7  ;;  %v1592_v10 = vor.u32 %v2041_v57, %v1589_v58  ;;  %v2023_v12 = vld [vmem:[#allocation8 + $0x34] sm:$0xf] }
  0xae   :  { %v273_v51 = vadd.f32 %v272_v25, %v111_v24  ;;  %v287_v26 = vadd.f32 %v286_v32, %v112_v27  ;;  %v1664_v20 = vor.u32 %v2059_v62, %v1661_v3  ;;  %v1728_v23 = vor.u32 %v2075_v4, %v1725_v5  ;;  %v2057_v25 = vld [vmem:[#allocation8 + $0x144] sm:$0xf]  ;;  %v1653_v52 = vld [vmem:[#allocation8 + $0x148] sm:$0xf0]  ;;  %v1565_v57 = vld [vmem:[#allocation8 + $0x98] sm:$0xf0] }
  0xaf   :  { %v329_v38 = vmax.f32 %v247_v22, 0.0  ;;  %v330_v42 = vmax.f32 %v261_v31, 0.0  ;;  %v1520_v29 = vor.u32 %v2023_v12, %v1517_v13  ;;  %v2073_v31 = vld [vmem:[#allocation8 + $0x1c4] sm:$0xf]  ;;  %v1701_v4 = vld [vmem:[#allocation8 + $0x1a8] sm:$0xf0] }
  0xb0   :  { %v323_v6 = vmax.f32 %v273_v51, 0.0  ;;  %v324_v14 = vmax.f32 %v287_v26, 0.0  ;;  %v2021_v32 = vld [vmem:[#allocation8 + $0x24] sm:$0xf]  ;;  %v2035_v26 = vld [vmem:[#allocation8 + $0x94] sm:$0xf] }
  0xb1   :  { %v2374_v44 = vpack.c.bf16 %v329_v38, %v321_v37  ;;  %1230 = vmatpush.bf16.msra.mxu0 %v1544_v28  ;;  %v2376_v50 = vpack.c.bf16 %v330_v42, %v322_v41  ;;  %1244 = vmatpush.bf16.msra.mxu1 %v1608_v33  ;;  %v1656_v38 = vor.u32 %v2057_v25, %v1653_v52  ;;  %v2053_v62 = vld [vmem:[#allocation8 + $0x124] sm:$0xf]  ;;  %v1805_v12 = vld [vmem:[#allocation8 + $0x278] sm:$0xf0]  ;;  %v2111_v13 = vld [vmem:[#allocation8 + $0x2f4] sm:$0xf] }
  0xb2   :  { %v1512_v51 = vor.u32 %v2021_v32, %v1509_v34  ;;  %v1568_v3 = vor.u32 %v2035_v26, %v1565_v57  ;;  %v2017_v5 = vld [vmem:[#allocation8 + $0x4] sm:$0xf]  ;;  %v1621_v34 = vld [vmem:[#allocation8 + $0x108] sm:$0xf0] }
  0xb3   :  { %1153 = vmatmul.bf16.vlgmr.msra.gmra.mxu2 %v2374_v44  ;;  %1167 = vmatmul.bf16.vlgmr.msra.gmra.mxu3 %v2376_v50  ;;  %v2093_v52 = vld [vmem:[#allocation8 + $0x264] sm:$0xf] }
  0xb4   :  { %1257 = vmatpush.bf16.msra.mxu2 %v1680_v43  ;;  %v300_v60 = vpop.f32.mrf.mxu2  ;;  %1271 = vmatpush.bf16.msra.mxu3 %v1744_v45  ;;  %v314_v63 = vpop.f32.mrf.mxu3  ;;  %v2049_v32 = vld [vmem:[#allocation8 + $0x104] sm:$0xf] }
  0xb5   :  { %1231 = vmatpush.bf16.msra.mxu0 %v1536_v46  ;;  %v274_v0 = vpop.f32.mrf.mxu0  ;;  %1245 = vmatpush.bf16.msra.mxu1 %v1600_v53  ;;  %v288_v9 = vpop.f32.mrf.mxu1  ;;  %v301_v21 = vadd.f32 %v300_v60, %v113_v59  ;;  %v315_v28 = vadd.f32 %v314_v63, %v114_v7  ;;  %v2071_v46 = vld [vmem:[#allocation8 + $0x1b4] sm:$0xf]  ;;  %v1576_v53 = vor.u32 %v2037_v35, %v1573_v36  ;;  %v1637_v63 = vld [vmem:[#allocation8 + $0x128] sm:$0xf0]  ;;  %v2065_v35 = vld [vmem:[#allocation8 + $0x184] sm:$0xf] }
  0xb6   :  { %v275_v8 = vadd.f32 %v274_v0, %v111_v24  ;;  %v289_v15 = vadd.f32 %v288_v9, %v112_v27  ;;  %v1717_v27 = vld [vmem:[#allocation8 + $0x1c8] sm:$0xf0]  ;;  %v2069_v0 = vld [vmem:[#allocation8 + $0x1a4] sm:$0xf]  ;;  %v2095_v9 = vld [vmem:[#allocation8 + $0x274] sm:$0xf] }
  0xb7   :  { %v325_v41 = vmax.f32 %v301_v21, 0.0  ;;  %v1720_v45 = vor.u32 %v2073_v31, %v1717_v27  ;;  %v326_v48 = vmax.f32 %v315_v28, 0.0  ;;  %v2067_v21 = vld [vmem:[#allocation8 + $0x194] sm:$0xf]  ;;  %v1632_v28 = vor.u32 %v2051_v17, %v1629_v18  ;;  %v1861_v31 = vld [vmem:[#allocation8 + $0x2e8] sm:$0xf0] }
  0xb8   :  { %v331_v19 = vmax.f32 %v275_v8, 0.0  ;;  %1258 = vmatpush.bf16.msra.mxu2 %v1672_v61  ;;  %v332_v22 = vmax.f32 %v289_v15, 0.0  ;;  %1272 = vmatpush.bf16.msra.mxu3 %v1736_v1  ;;  %v1712_v61 = vor.u32 %v2071_v46, %v1709_v47  ;;  %v1557_v8 = vld [vmem:[#allocation8 + $0x88] sm:$0xf0]  ;;  %v1704_v15 = vor.u32 %v2069_v0, %v1701_v4  ;;  %v1789_v46 = vld [vmem:[#allocation8 + $0x258] sm:$0xf0] }
  0xb9   :  { %1232 = vmatpush.bf16.msra.mxu0 %v1528_v2  ;;  %1246 = vmatpush.bf16.msra.mxu1 %v1592_v10  ;;  %v1504_v2 = vor.u32 %v2019_v54, %v1501_v55  ;;  %v1640_v10 = vor.u32 %v2053_v62, %v1637_v63  ;;  %v1685_v36 = vld [vmem:[#allocation8 + $0x188] sm:$0xf0]  ;;  %v2107_v47 = vld [vmem:[#allocation8 + $0x2d4] sm:$0xf]  ;;  %v2125_v54 = vld [vmem:[#allocation8 + $0x364] sm:$0xf] }
  0xba   :  { %v2382_v24 = vpack.c.bf16 %v331_v19, %v323_v6  ;;  %v2384_v33 = vpack.c.bf16 %v332_v22, %v324_v14  ;;  %v1493_v6 = vld [vmem:[#allocation8 + $0x8] sm:$0xf0]  ;;  %v1869_v14 = vld [vmem:[#allocation8 + $0x2f8] sm:$0xf0]  ;;  %v2141_v57 = vld [vmem:[#allocation8 + $0x3e4] sm:$0xf] }
  0xbb   :  { %v1496_v19 = vor.u32 %v2017_v5, %v1493_v6  ;;  %v1693_v22 = vld [vmem:[#allocation8 + $0x198] sm:$0xf0]  ;;  %v1872_v25 = vor.u32 %v2111_v13, %v1869_v14  ;;  %v1925_v55 = vld [vmem:[#allocation8 + $0x368] sm:$0xf0]  ;;  %v2105_v62 = vld [vmem:[#allocation8 + $0x2c4] sm:$0xf] }
  0xbc   :  { %1259 = vmatpush.bf16.msra.mxu2 %v1664_v20  ;;  %v302_v37 = vpop.f32.mrf.mxu2  ;;  %1181 = vmatmul.bf16.vlgmr.msrb.gmra.mxu0 %v2382_v24  ;;  %v316_v43 = vpop.f32.mrf.mxu3  ;;  %v1696_v27 = vor.u32 %v2067_v21, %v1693_v22  ;;  %v1845_v63 = vld [vmem:[#allocation8 + $0x2c8] sm:$0xf0]  ;;  %v2139_v5 = vld [vmem:[#allocation8 + $0x3d4] sm:$0xf]  ;;  %v1981_v6 = vld [vmem:[#allocation8 + $0x3d8] sm:$0xf0] }
  0xbd   :  { %1273 = vmatpush.bf16.msra.mxu3 %v1728_v23  ;;  %v303_v42 = vadd.f32 %v302_v37, %v113_v59  ;;  %1195 = vmatmul.bf16.vlgmr.msrb.gmra.mxu1 %v2384_v33  ;;  %v317_v49 = vadd.f32 %v316_v43, %v114_v7  ;;  %v1648_v59 = vor.u32 %v2055_v39, %v1645_v40  ;;  %v2033_v7 = vld [vmem:[#allocation8 + $0x84] sm:$0xf]  ;;  %v2127_v37 = vld [vmem:[#allocation8 + $0x374] sm:$0xf]  ;;  %v1765_v22 = vld [vmem:[#allocation8 + $0x228] sm:$0xf0] }
  0xbe   :  { %1233 = vmatpush.bf16.msra.mxu0 %v1520_v29  ;;  %1247 = vmatpush.bf16.msra.mxu1 %v1584_v30  ;;  %v1560_v20 = vor.u32 %v2033_v7, %v1557_v8  ;;  %v1808_v23 = vor.u32 %v2095_v9, %v1805_v12  ;;  %v1797_v29 = vld [vmem:[#allocation8 + $0x268] sm:$0xf0]  ;;  %v2109_v30 = vld [vmem:[#allocation8 + $0x2e4] sm:$0xf]  ;;  %v2091_v43 = vld [vmem:[#allocation8 + $0x254] sm:$0xf]  ;;  %v1848_v4 = vor.u32 %v2105_v62, %v1845_v63 }
  0xbf   :  { %v333_v56 = vmax.f32 %v303_v42, 0.0  ;;  %v334_v58 = vmax.f32 %v317_v49, 0.0  ;;  %v1800_v39 = vor.u32 %v2093_v52, %v1797_v29  ;;  %v1864_v40 = vor.u32 %v2109_v30, %v1861_v31  ;;  %v1997_v42 = vld [vmem:[#allocation8 + $0x3f8] sm:$0xf0]  ;;  %v2087_v7 = vld [vmem:[#allocation8 + $0x234] sm:$0xf] }
  0xc0   :  { %1260 = vmatpush.bf16.msra.mxu2 %v1656_v38  ;;  %v1933_v38 = vld [vmem:[#allocation8 + $0x378] sm:$0xf0]  ;;  %v1688_v49 = vor.u32 %v2065_v35, %v1685_v36  ;;  %v2103_v9 = vld [vmem:[#allocation8 + $0x2b4] sm:$0xf]  ;;  %v1984_v13 = vor.u32 %v2139_v5, %v1981_v6  ;;  %v2121_v14 = vld [vmem:[#allocation8 + $0x344] sm:$0xf] }
  0xc1   :  { %v2388_v60 = vpack.c.bf16 %v333_v56, %v325_v41  ;;  %1274 = vmatpush.bf16.msra.mxu3 %v1720_v45  ;;  %v2390_v1 = vpack.c.bf16 %v334_v58, %v326_v48  ;;  %v2143_v41 = vld [vmem:[#allocation8 + $0x3f4] sm:$0xf]  ;;  %v1624_v45 = vor.u32 %v2049_v32, %v1621_v34  ;;  %v1853_v48 = vld [vmem:[#allocation8 + $0x2d8] sm:$0xf0]  ;;  %v1792_v56 = vor.u32 %v2091_v43, %v1789_v46  ;;  %v1989_v58 = vld [vmem:[#allocation8 + $0x3e8] sm:$0xf0] }
  0xc2   :  { %1234 = vmatpush.bf16.msra.mxu0 %v1512_v51  ;;  %1248 = vmatpush.bf16.msra.mxu1 %v1576_v53  ;;  %v1936_v51 = vor.u32 %v2127_v37, %v1933_v38  ;;  %v2000_v53 = vor.u32 %v2143_v41, %v1997_v42  ;;  %v1856_v26 = vor.u32 %v2107_v47, %v1853_v48  ;;  %v1773_v8 = vld [vmem:[#allocation8 + $0x238] sm:$0xf0]  ;;  %v2085_v21 = vld [vmem:[#allocation8 + $0x224] sm:$0xf]  ;;  %v2119_v52 = vld [vmem:[#allocation8 + $0x334] sm:$0xf] }
  0xc3   :  { %1209 = vmatmul.bf16.vlgmr.msrb.gmra.mxu2 %v2388_v60  ;;  %1223 = vmatmul.bf16.vlgmr.msrb.gmra.mxu3 %v2390_v1  ;;  %v1992_v0 = vor.u32 %v2141_v57, %v1989_v58  ;;  %v1776_v17 = vor.u32 %v2087_v7, %v1773_v8  ;;  %v1768_v29 = vor.u32 %v2085_v21, %v1765_v22  ;;  %v2135_v31 = vld [vmem:[#allocation8 + $0x3b4] sm:$0xf]  ;;  %v1757_v34 = vld [vmem:[#allocation8 + $0x218] sm:$0xf0]  ;;  %v2133_v43 = vld [vmem:[#allocation8 + $0x3a4] sm:$0xf] }
  0xc4   :  { %1261 = vmatpush.bf16.msra.mxu2 %v1648_v59  ;;  %v2089_v59 = vld [vmem:[#allocation8 + $0x244] sm:$0xf]  ;;  %v2083_v32 = vld [vmem:[#allocation8 + $0x214] sm:$0xf]  ;;  %v1821_v36 = vld [vmem:[#allocation8 + $0x298] sm:$0xf0] }
  0xc5   :  { %1275 = vmatpush.bf16.msra.mxu3 %v1712_v61  ;;  %v1781_v61 = vld [vmem:[#allocation8 + $0x248] sm:$0xf0]  ;;  %v2099_v35 = vld [vmem:[#allocation8 + $0x294] sm:$0xf]  ;;  %v1760_v41 = vor.u32 %v2083_v32, %v1757_v34  ;;  %v2081_v46 = vld [vmem:[#allocation8 + $0x204] sm:$0xf] }
  0xc6   :  { %1235 = vmatpush.bf16.msra.mxu0 %v1504_v2  ;;  %1249 = vmatpush.bf16.msra.mxu1 %v1568_v3  ;;  %v1917_v2 = vld [vmem:[#allocation8 + $0x358] sm:$0xf0]  ;;  %v1784_v3 = vor.u32 %v2089_v59, %v1781_v61  ;;  %v1824_v42 = vor.u32 %v2099_v35, %v1821_v36  ;;  %v1749_v47 = vld [vmem:[#allocation8 + $0x208] sm:$0xf0]  ;;  %v2097_v48 = vld [vmem:[#allocation8 + $0x284] sm:$0xf] }
  0xc7   :  { %v2131_v57 = vld [vmem:[#allocation8 + $0x394] sm:$0xf]  ;;  %v1949_v58 = vld [vmem:[#allocation8 + $0x398] sm:$0xf0]  ;;  %v2113_v62 = vld [vmem:[#allocation8 + $0x304] sm:$0xf] }
  0xc8   :  { %1262 = vmatpush.bf16.msra.mxu2 %v1640_v10  ;;  %v1837_v10 = vld [vmem:[#allocation8 + $0x2b8] sm:$0xf0]  ;;  %v1952_v61 = vor.u32 %v2131_v57, %v1949_v58  ;;  %v1877_v63 = vld [vmem:[#allocation8 + $0x308] sm:$0xf0]  ;;  %v471_v6 = vld [vmem:[%s2415_s4] sm:$0x3] }
  0xc9   :  { %1276 = vmatpush.bf16.msra.mxu3 %v1704_v15  ;;  %v1909_v15 = vld [vmem:[#allocation8 + $0x348] sm:$0xf0]  ;;  %v1840_v18 = vor.u32 %v2103_v9, %v1837_v10  ;;  %v473_v8 = vperm.slane %v471_v6, 0 }
  0xca   :  { %1236 = vmatpush.bf16.msra.mxu0 %v1496_v19  ;;  %1250 = vmatpush.bf16.msra.mxu1 %v1560_v20  ;;  %v2137_v19 = vld [vmem:[#allocation8 + $0x3c4] sm:$0xf]  ;;  %v1973_v20 = vld [vmem:[#allocation8 + $0x3c8] sm:$0xf0] }
  0xcc   :  { %1263 = vmatpush.bf16.msra.mxu2 %v1632_v28  ;;  %v1901_v28 = vld [vmem:[#allocation8 + $0x338] sm:$0xf0] }
  0xcd   :  { %1277 = vmatpush.bf16.msra.mxu3 %v1696_v27  ;;  %1237 = vmatmul.bf16.vlgmr.msra.gmra.mxu0 %v2366_v11  ;;  %v1928_v11 = vor.u32 %v2125_v54, %v1925_v55  ;;  %v1965_v27 = vld [vmem:[#allocation8 + $0x3b8] sm:$0xf0]  ;;  %v1904_v37 = vor.u32 %v2119_v52, %v1901_v28  ;;  %v2115_v54 = vld [vmem:[#allocation8 + $0x314] sm:$0xf] }
  0xce   :  { %1285 = vmatpush.bf16.msrb.mxu0 %v1808_v23  ;;  %1299 = vmatpush.bf16.msrb.mxu1 %v1872_v25  ;;  %v1829_v23 = vld [vmem:[#allocation8 + $0x2a8] sm:$0xf0]  ;;  %v1976_v25 = vor.u32 %v2137_v19, %v1973_v20  ;;  %v1968_v38 = vor.u32 %v2135_v31, %v1965_v27  ;;  %v1885_v55 = vld [vmem:[#allocation8 + $0x318] sm:$0xf0] }
  0xcf   :  { %1251 = vmatmul.bf16.vlgmr.msra.gmra.mxu1 %v2368_v16  ;;  %v2123_v16 = vld [vmem:[#allocation8 + $0x354] sm:$0xf]  ;;  %v1888_v59 = vor.u32 %v2115_v54, %v1885_v55 }
  0xd0   :  { %1264 = vmatpush.bf16.msra.mxu2 %v1624_v45  ;;  %v1920_v12 = vor.u32 %v2123_v16, %v1917_v2  ;;  %v1957_v45 = vld [vmem:[#allocation8 + $0x3a8] sm:$0xf0]  ;;  %v1880_v16 = vor.u32 %v2113_v62, %v1877_v63 }
  0xd1   :  { %1278 = vmatpush.bf16.msra.mxu3 %v1688_v49  ;;  %v1813_v49 = vld [vmem:[#allocation8 + $0x288] sm:$0xf0] }
  0xd2   :  { %1286 = vmatpush.bf16.msrb.mxu0 %v1800_v39  ;;  %1300 = vmatpush.bf16.msrb.mxu1 %v1864_v40  ;;  %v2117_v39 = vld [vmem:[#allocation8 + $0x324] sm:$0xf]  ;;  %v1893_v40 = vld [vmem:[#allocation8 + $0x328] sm:$0xf0] }
  0xd3   :  { %1265 = vmatmul.bf16.vlgmr.msra.gmra.mxu2 %v2374_v44  ;;  %v2101_v44 = vld [vmem:[#allocation8 + $0x2a4] sm:$0xf] }
  0xd4   :  { %1313 = vmatpush.bf16.msrb.mxu2 %v1936_v51  ;;  %1279 = vmatmul.bf16.vlgmr.msra.gmra.mxu3 %v2376_v50  ;;  %v1912_v50 = vor.u32 %v2121_v14, %v1909_v15  ;;  %v1832_v30 = vor.u32 %v2101_v44, %v1829_v23  ;;  %v1896_v51 = vor.u32 %v2117_v39, %v1893_v40 }
  0xd5   :  { %1327 = vmatpush.bf16.msrb.mxu3 %v2000_v53  ;;  %v1960_v53 = vor.u32 %v2133_v43, %v1957_v45  ;;  %v1345_v43 = vld [vmem:[%s2416_s5] sm:$0x3]  ;;  %s2294_s5 = smov [#allocation10]  }
  0xd6   :  { %1287 = vmatpush.bf16.msrb.mxu0 %v1792_v56  ;;  %1301 = vmatpush.bf16.msrb.mxu1 %v1856_v26  ;;  %v1752_v56 = vor.u32 %v2081_v46, %v1749_v47  ;;  %v1816_v26 = vor.u32 %v2097_v48, %v1813_v49  ;;  %v1347_v46 = vperm.slane %v1345_v43, 0  ;;  %s1403_s20 = sshll.u32 %s2294_s5, 4  ;;  %s1404_s20 = int_to_ptr.vmem [resolvable:$true] %s1403_s20 }
  0xd8   :  { %1314 = vmatpush.bf16.msrb.mxu2 %v1928_v11  ;;  %v2129_v11 = vld [vmem:[#allocation8 + $0x384] sm:$0xf] }
  0xd9   :  { %1328 = vmatpush.bf16.msrb.mxu3 %v1992_v0  ;;  %v1941_v0 = vld [vmem:[#allocation8 + $0x388] sm:$0xf0] }
  0xda   :  { %1288 = vmatpush.bf16.msrb.mxu0 %v1784_v3  ;;  %1302 = vmatpush.bf16.msrb.mxu1 %v1848_v4  ;;  %v1944_v2 = vor.u32 %v2129_v11, %v1941_v0 }
  0xdc   :  { %1315 = vmatpush.bf16.msrb.mxu2 %v1920_v12 }
  0xdd   :  { %1329 = vmatpush.bf16.msrb.mxu3 %v1984_v13 }
  0xde   :  { %1289 = vmatpush.bf16.msrb.mxu0 %v1776_v17  ;;  %1303 = vmatpush.bf16.msrb.mxu1 %v1840_v18 }
  0xe0   :  { %1316 = vmatpush.bf16.msrb.mxu2 %v1912_v50 }
  0xe1   :  { %1330 = vmatpush.bf16.msrb.mxu3 %v1976_v25 }
  0xe2   :  { %1290 = vmatpush.bf16.msrb.mxu0 %v1768_v29  ;;  %1304 = vmatpush.bf16.msrb.mxu1 %v1832_v30 }
  0xe4   :  { %1317 = vmatpush.bf16.msrb.mxu2 %v1904_v37 }
  0xe5   :  { %1331 = vmatpush.bf16.msrb.mxu3 %v1968_v38 }
  0xe6   :  { %1291 = vmatpush.bf16.msrb.mxu0 %v1760_v41  ;;  %1305 = vmatpush.bf16.msrb.mxu1 %v1824_v42  ;;  %v474_v42 = vperm.slane %v471_v6, 1 }
  0xe8   :  { %1318 = vmatpush.bf16.msrb.mxu2 %v1896_v51 }
  0xe9   :  { %1332 = vmatpush.bf16.msrb.mxu3 %v1960_v53 }
  0xea   :  { %1292 = vmatpush.bf16.msrb.mxu0 %v1752_v56  ;;  %1306 = vmatpush.bf16.msrb.mxu1 %v1816_v26 }
  0xec   :  { %1319 = vmatpush.bf16.msrb.mxu2 %v1888_v59 }
  0xed   :  { %1333 = vmatpush.bf16.msrb.mxu3 %v1952_v61  ;;  %1293 = vmatmul.bf16.vlgmr.msrb.gmra.mxu0 %v2382_v24 }
  0xee   :  { %1307 = vmatmul.bf16.vlgmr.msrb.gmra.mxu1 %v2384_v33 }
  0xf0   :  { %1320 = vmatpush.bf16.msrb.mxu2 %v1880_v16 }
  0xf1   :  { %1334 = vmatpush.bf16.msrb.mxu3 %v1944_v2 }
  0xf3   :  { %1321 = vmatmul.bf16.vlgmr.msrb.gmra.mxu2 %v2388_v60 }
  0xf4   :  { %1335 = vmatmul.bf16.vlgmr.msrb.gmra.mxu3 %v2390_v1 }
 0x129   :  { %v1126_v3 = vpop.f32.mrf.mxu0  ;;  %v1140_v4 = vpop.f32.mrf.mxu1 }
 0x12a   :  { %v1127_v10 = vadd.f32 %v1126_v3, %v473_v8 }
 0x12c   :  { %v1141_v14 = vadd.f32 %v1140_v4, %v1127_v10 }
 0x131   :  { %v1128_v5 = vpop.f32.mrf.mxu0  ;;  %v1142_v24 = vpop.f32.mrf.mxu1 }
 0x132   :  { %v1129_v12 = vadd.f32 %v1128_v5, %v473_v8 }
 0x134   :  { %v1143_v15 = vadd.f32 %v1142_v24, %v1129_v12  ;;  %v1348_v12 = vperm.slane %v1345_v43, 1 }
 0x136   :  { %v1154_v7 = vpop.f32.mrf.mxu2  ;;  %v1168_v9 = vpop.f32.mrf.mxu3 }
 0x137   :  { %v1155_v17 = vadd.f32 %v1154_v7, %v1141_v14 }
 0x139   :  { %v1182_v33 = vpop.f32.mrf.mxu0  ;;  %v1169_v19 = vadd.f32 %v1168_v9, %v1155_v17 }
 0x13a   :  { %v1196_v18 = vpop.f32.mrf.mxu1 }
 0x13b   :  { %v1183_v23 = vadd.f32 %v1182_v33, %v1169_v19 }
 0x13d   :  { %v1197_v52 = vadd.f32 %v1196_v18, %v1183_v23 }
 0x13e   :  { %v1156_v13 = vpop.f32.mrf.mxu2  ;;  %v1170_v60 = vpop.f32.mrf.mxu3 }
 0x13f   :  { %v1157_v1 = vadd.f32 %v1156_v13, %v1143_v15 }
 0x141   :  { %v1171_v20 = vadd.f32 %v1170_v60, %v1157_v1  ;;  %v1184_v21 = vpop.f32.mrf.mxu0 }
 0x142   :  { %v1198_v25 = vpop.f32.mrf.mxu1 }
 0x143   :  { %v1185_v50 = vadd.f32 %v1184_v21, %v1171_v20 }
 0x145   :  { %v1199_v28 = vadd.f32 %v1198_v25, %v1185_v50 }
 0x146   :  { %v1210_v22 = vpop.f32.mrf.mxu2  ;;  %v1224_v44 = vpop.f32.mrf.mxu3 }
 0x147   :  { %v1211_v30 = vadd.f32 %v1210_v22, %v1197_v52 }
 0x149   :  { %v1225_v34 = vadd.f32 %v1224_v44, %v1211_v30 }
 0x14a   :  { %v1238_v37 = vpop.f32.mrf.mxu0 }
 0x14b   :  { %v1341_v36 = vmax.f32 %v1225_v34, 0.0  ;;  %v1239_v48 = vadd.f32 %v1238_v37, %v474_v42 }
 0x14c   :  { %v1252_v38 = vpop.f32.mrf.mxu1 }
 0x14d   :  { %v1253_v54 = vadd.f32 %v1252_v38, %v1239_v48 }
 0x14e   :  { %v1212_v29 = vpop.f32.mrf.mxu2  ;;  %v1226_v27 = vpop.f32.mrf.mxu3 }
 0x14f   :  { %v1213_v31 = vadd.f32 %v1212_v29, %v1199_v28 }
 0x151   :  { %v1227_v32 = vadd.f32 %v1226_v27, %v1213_v31 }
 0x152   :  { %v1240_v39 = vpop.f32.mrf.mxu0 }
 0x153   :  { %v1343_v35 = vmax.f32 %v1227_v32, 0.0  ;;  %v1241_v49 = vadd.f32 %v1240_v39, %v474_v42 }
 0x154   :  { %v1254_v45 = vpop.f32.mrf.mxu1 }
 0x155   :  { %1365 = vmatpush.xpose.msra.mxu0 %v1343_v35  ;;  %v1255_v55 = vadd.f32 %v1254_v45, %v1241_v49 }
 0x156   :  { %v1266_v40 = vpop.f32.mrf.mxu2 }
 0x157   :  { %v1280_v41 = vpop.f32.mrf.mxu3  ;;  %v1267_v26 = vadd.f32 %v1266_v40, %v1253_v54 }
 0x159   :  { %1366 = vmatpush.xpose.msra.mxu0 %v1341_v36  ;;  %v1281_v61 = vadd.f32 %v1280_v41, %v1267_v26 }
 0x15c   :  { %1367 = vmatmul.f32.vlgmr.msra.gmra.mxu0 %v1347_v46 }
 0x15e   :  { %v1268_v51 = vpop.f32.mrf.mxu2 }
 0x15f   :  { %v1282_v53 = vpop.f32.mrf.mxu3  ;;  %v1269_v57 = vadd.f32 %v1268_v51, %v1255_v55 }
 0x161   :  { %v1283_v62 = vadd.f32 %v1282_v53, %v1269_v57 }
 0x16a   :  { %v1294_v47 = vpop.f32.mrf.mxu0 }
 0x16b   :  { %v1308_v56 = vpop.f32.mrf.mxu1  ;;  %v1295_v11 = vadd.f32 %v1294_v47, %v1281_v61 }
 0x16d   :  { %v1309_v2 = vadd.f32 %v1308_v56, %v1295_v11 }
 0x172   :  { %v1296_v58 = vpop.f32.mrf.mxu0 }
 0x173   :  { %v1297_v0 = vadd.f32 %v1296_v58, %v1283_v62  ;;  %v1310_v16 = vpop.f32.mrf.mxu1 }
 0x175   :  { %v1311_v3 = vadd.f32 %v1310_v16, %v1297_v0 }
 0x176   :  { %v1322_v59 = vpop.f32.mrf.mxu2 }
 0x177   :  { %v1336_v63 = vpop.f32.mrf.mxu3  ;;  %v1323_v5 = vadd.f32 %v1322_v59, %v1309_v2 }
 0x179   :  { %v1337_v9 = vadd.f32 %v1336_v63, %v1323_v5 }
 0x17b   :  { %v1342_v10 = vmax.f32 %v1337_v9, 0.0 }
 0x17e   :  { %v1324_v4 = vpop.f32.mrf.mxu2 }
 0x17f   :  { %v1325_v6 = vadd.f32 %v1324_v4, %v1311_v3  ;;  %v1338_v7 = vpop.f32.mrf.mxu3 }
 0x181   :  { %v1339_v8 = vadd.f32 %v1338_v7, %v1325_v6 }
 0x183   :  { %v1344_v24 = vmax.f32 %v1339_v8, 0.0 }
 0x185   :  { %1385 = vmatpush.xpose.msra.mxu1 %v1344_v24 }
 0x189   :  { %1386 = vmatpush.xpose.msra.mxu1 %v1342_v10 }
 0x18c   :  { %1387 = vmatmul.f32.vlgmr.msra.gmra.mxu1 %v1348_v12 }
 0x1d9   :  { %v1368_v33 = vpop.f32.mrf.mxu0 }
 0x209   :  { %v1388_v13 = vpop.f32.mrf.mxu1 }
 0x20a   :  { %v1389_v14 = vadd.f32 %v1388_v13, %v1368_v33 }
 0x20c   :  { %v1391_v15 = vsub.f32 0.0, %v1389_v14 }
 0x20e   :  { %v1392_v60 = vmul.f32 1.442695, %v1391_v15 }
 0x210   :  { %2154 = vpow2.f32 %v1392_v60 }
 0x216   :  { %v2155_v17 = vpop.eup %2154 }
 0x217   :  { %v1394_v1 = vadd.f32 1.0, %v2155_v17 }
 0x219   :  { %2156 = vrcp.f32 %v1394_v1 }
 0x21f   :  { %v2157_v18 = vpop.eup %2156 }
 0x220   :  { %1397 = vst.msk [vmem:[#allocation10] sm:$0x1] %vm1396_vm1, %v2157_v18 }
 0x221   :  { %1408 = dma.vmem_to_hbm [thread:$0]  %s1404_s20, 16, %s1406_s23, [#allocation4]  }
 0x222   :  { %2284 = dma.done.wait [#allocation4], 16  }
 0x223   :  { %2285 = vsyncadd [#allocation4], 4294967280 }
 0x224   :  { %1413 = vsyncpa [#allocation3], 1 }
 0x225   :  { %1414 = vsyncpa [#allocation6], 1 }
 0x226   :  { %1415 = vsyncpa [#allocation9], 1 }
 0x227   :  { %1416 = vsyncpa [#allocation4], 1 }

</bundles_post_ra>
